<compile_context>
chip_gen: v6e
topology: v6e:2x2x1
jax: 0.10.0
libtpu: 0.0.40
codegen_flags: <defaults>
</compile_context>

<pallas_src>
import jax
import jax.numpy as jnp
import numpy as np
from jax.experimental import pallas as pl
from jax.experimental.pallas import tpu as pltpu


# ------------------------- index-table construction ------------------------ #
def build_relative_position_index(window_size):
    """NumPy replica of the PyTorch __init__ buffer computation."""
    wh, ww = window_size
    num_relative_distance = (2 * wh - 1) * (2 * ww - 1) + 3

    coords_h = np.arange(wh)
    coords_w = np.arange(ww)
    coords = np.stack(np.meshgrid(coords_h, coords_w, indexing="ij"))   # (2, wh, ww)
    coords_flatten = coords.reshape(2, -1)                              # (2, L)
    rel = coords_flatten[:, :, None] - coords_flatten[:, None, :]       # (2, L, L)
    rel = rel.transpose(1, 2, 0).copy()                                 # (L, L, 2)
    rel[:, :, 0] += wh - 1
    rel[:, :, 1] += ww - 1
    rel[:, :, 0] *= 2 * ww - 1

    L = wh * ww
    rpi = np.zeros((L + 1, L + 1), dtype=np.int64)
    rpi[1:, 1:] = rel.sum(-1)
    rpi[0, 0:] = num_relative_distance - 3
    rpi[0:, 0] = num_relative_distance - 2
    rpi[0, 0] = num_relative_distance - 1
    return rpi.astype(np.int32), num_relative_distance


# ------------------------------ Pallas kernel ------------------------------ #
def _rel_pos_bias_kernel(idx_ref, tbl_ref, o_ref):
    # idx_ref: (1, TM)   int32 -- flattened relative_position_index column tile
    # tbl_ref: (Hp, Dp)  f32   -- transposed (sublane-padded) bias table, resident
    # o_ref:   (Hp, TM)        -- bias tile, already in (heads, query*key) layout
    idx = idx_ref[...]
    tbl_t = tbl_ref[...]
    dp = tbl_t.shape[1]
    tm = idx.shape[1]

    # one-hot(idx) along the relative-distance axis: (Dp, TM) on the VPU.
    d_iota = jax.lax.broadcasted_iota(jnp.int32, (dp, tm), 0)
    onehot = (d_iota == idx).astype(tbl_t.dtype)

    # Gather-as-matmul on the MXU: (Hp, Dp) @ (Dp, TM) -> (Hp, TM).
    o_ref[...] = jnp.dot(
        tbl_t, onehot, preferred_element_type=jnp.float32
    ).astype(o_ref.dtype)


# ------------------------------ Module wrapper ------------------------------ #
@jax.jit
def relative_position_bias_forward(table, rel_pos_index):
    """table: (num_relative_distance, H) f32. rel_pos_index: (N, N) int32.

    Returns (H, N, N) == table[rel_pos_index].transpose(2, 0, 1).
    """
    D, H = table.shape
    N = rel_pos_index.shape[0]
    M = N * N

    # Sublane-align both the contraction dim (relative distances) and the
    # output sublane dim (heads) so all loads/stores are unmasked.
    Dp = ((D + 7) // 8) * 8
    Hp = ((H + 7) // 8) * 8

    # Lane tile: multiple of 128, capped so the (Dp, tm) one-hot intermediate
    # stays within ~2 MiB, and clamped so tiny inputs don't over-pad.
    onehot_budget_bytes = 2 * 1024 * 1024
    tm = max(128, min(1024, (onehot_budget_bytes // (Dp * 4)) // 128 * 128))
    tm = min(tm, ((M + 127) // 128) * 128)
    Mp = ((M + tm - 1) // tm) * tm

    # Flatten + pad the tiny int32 index slab (padded lanes gather row 0 of
    # the table and are sliced off afterwards).
    idx_flat = jnp.pad(
        rel_pos_index.reshape(1, M).astype(jnp.int32), ((0, 0), (0, Mp - M))
    )

    # Heads on sublanes, flattened (N*N) on lanes. Padded rows/cols are zero
    # and never contribute to the sliced output.
    tbl_t = jnp.pad(table.T, ((0, Hp - H), (0, Dp - D)))

    out = pl.pallas_call(
        _rel_pos_bias_kernel,
        out_shape=jax.ShapeDtypeStruct((Hp, Mp), table.dtype),
        grid_spec=pltpu.PrefetchScalarGridSpec(
            num_scalar_prefetch=0,
            grid=(Mp // tm,),
            in_specs=[
                pl.BlockSpec((1, tm), lambda i: (0, i)),     # index column tile
                pl.BlockSpec((Hp, Dp), lambda i: (0, 0)),    # grid-invariant table
            ],
            out_specs=pl.BlockSpec((Hp, tm), lambda i: (0, i)),
        ),
        compiler_params=pltpu.CompilerParams(
            dimension_semantics=("parallel",)),
        cost_estimate=pl.CostEstimate(
            flops=2 * Hp * Dp * Mp,
            transcendentals=0,
            bytes_accessed=4 * (Mp + Hp * Dp + Hp * Mp),
        ),
    )(idx_flat, tbl_t)

    return out[:H, :M].reshape(H, N, N)


# Pure-JAX reference for correctness check.
def _ref_forward(table, rel_pos_index):
    N = rel_pos_index.shape[0]
    bias = table[rel_pos_index.reshape(-1)].reshape(N, N, -1)
    return jnp.transpose(bias, (2, 0, 1))


if __name__ == "__main__":
    window_size = (4, 4)     # -> N = 4*4 + 1 = 17 tokens, D = 7*7 + 3 = 52
    num_heads = 8

    rel_pos_index_np, num_rel_dist = build_relative_position_index(window_size)
    rel_pos_index = jnp.asarray(rel_pos_index_np)

    # PyTorch initializes the table to zeros; use random values here so the
    # correctness check is meaningful.
    key = jax.random.PRNGKey(0)
    table = jax.random.normal(key, (num_rel_dist, num_heads), jnp.float32)

    y = relative_position_bias_forward(table, rel_pos_index)
    y = jax.block_until_ready(y)

    y_ref = _ref_forward(table, rel_pos_index)
    np.testing.assert_allclose(np.asarray(y), np.asarray(y_ref),
                               rtol=1e-6, atol=1e-6)
    n_tok = window_size[0] * window_size[1] + 1
    assert y.shape == (num_heads, n_tok, n_tok)

    print("KERNEL_OK")
</pallas_src>

<mosaic_0001>
module attributes {stable_mosaic.version = 11 : i64} {
  func.func @_rel_pos_bias_kernel(%arg0: i32, %arg1: memref<1x384xi32, #tpu.memory_space<vmem>>, %arg2: memref<8x56xf32, #tpu.memory_space<vmem>>, %arg3: memref<8x384xf32, #tpu.memory_space<vmem>>) attributes {dimension_semantics = [#tpu.dimension_semantics<parallel>], iteration_bounds = array<i64: 1>, scalar_prefetch = 0 : i64, scratch_operands = 0 : i64, tpu.core_type = #tpu.core_type<tc>, window_params = [{transform_indices = @transform_0, window_bounds = array<i64: 1, 384>}, {pipeline_mode = #tpu.pipeline_mode<synchronous>, transform_indices = @transform_1, window_bounds = array<i64: 8, 56>}, {transform_indices = @transform_2, window_bounds = array<i64: 8, 384>}]} {
    %c0 = arith.constant 0 : index
    %c0_0 = arith.constant 0 : index
    %0 = vector.load %arg1[%c0, %c0_0] : memref<1x384xi32, #tpu.memory_space<vmem>>, vector<1x384xi32>
    %c0_1 = arith.constant 0 : index
    %c0_2 = arith.constant 0 : index
    %1 = vector.load %arg2[%c0_1, %c0_2] : memref<8x56xf32, #tpu.memory_space<vmem>>, vector<8x56xf32>
    %2 = tpu.iota {dimensions = array<i32: 0>} : vector<56x384xi32>
    %3 = vector.broadcast %0 : vector<1x384xi32> to vector<56x384xi32>
    %4 = arith.cmpi eq, %2, %3 : vector<56x384xi32>
    %5 = arith.extui %4 : vector<56x384xi1> to vector<56x384xi32>
    %6 = arith.sitofp %5 : vector<56x384xi32> to vector<56x384xf32>
    %cst = arith.constant dense<0.000000e+00> : vector<8x384xf32>
    %7 = tpu.matmul %1, %6, %cst {dimension_numbers = #tpu.dot_dimension_numbers<[1], [0], [0], [1], [0, 0, 1, 1], [], []>} : vector<8x56xf32>, vector<56x384xf32>, vector<8x384xf32> -> vector<8x384xf32>
    %c0_3 = arith.constant 0 : index
    %c0_4 = arith.constant 0 : index
    %8 = vector.load %arg3[%c0_3, %c0_4] : memref<8x384xf32, #tpu.memory_space<vmem>>, vector<8x384xf32>
    tpu.vector_store %arg3[%c0_3, %c0_4], %7 {strides = array<i32>} : memref<8x384xf32, #tpu.memory_space<vmem>>, vector<8x384xf32>,
    return
  }
  func.func @transform_0(%arg0: i32) -> (i32, i32) {
    %c0_i32 = arith.constant 0 : i32
    %c0_i32_0 = arith.constant 0 : i32
    return %c0_i32, %arg0 : i32, i32
  }
  func.func @transform_1(%arg0: i32) -> (i32, i32) {
    %c0_i32 = arith.constant 0 : i32
    %c0_i32_0 = arith.constant 0 : i32
    %c0_i32_1 = arith.constant 0 : i32
    return %c0_i32, %c0_i32_0 : i32, i32
  }
  func.func @transform_2(%arg0: i32) -> (i32, i32) {
    %c0_i32 = arith.constant 0 : i32
    %c0_i32_0 = arith.constant 0 : i32
    return %c0_i32, %arg0 : i32, i32
  }
}

</mosaic_0001>

<bundles_post_ra>
// kernel: relative_position_bias_forward.1
= control target key start
LH: loop header
LB: loop body
LE: loop exit
PB: predicated region body
PF: predicated region fallthrough
CT: control target
= control target key end

     0   :  { %v13_v0 = vlaneseq  ;;  %v320_v1 = vmov 0.0   ;;  %vm321_vm0 = vmmov 0   ;;  %v322_v14 = vmov 1.0   ;;  %s376_s0 = inlined_call_operand.vmem [shape: s32[1,384], index: 0, kind: input, shape index: {}]   ;;  %s377_s1 = inlined_call_operand.vmem [shape: f32[8,56], index: 1, kind: input, shape index: {}]   ;;  %s378_s2 = inlined_call_operand.vmem [shape: f32[8,384], index: 2, kind: output, shape index: {}]  }
   0x1   :  { %300 = vmatprep.subr.mxu1 %v320_v1  ;;  %314 = vmatprep.mubr.msk.f32.mxu1 %vm321_vm0, %v320_v1  ;;  %v11_v3 = vld [vmem:[%s376_s0] sm:$0x7] }
   0x2   :  { %v340_v2 = vshrl.u32 %v13_v0, 7  ;;  %164 = vmatprep.mubr.f32.mxu0 %v320_v1  ;;  %v12_v17 = vld [vmem:[%s377_s1] sm:$0xff] }
   0x4   :  { %v20_v4 = vadd.s32 48, %v340_v2  ;;  %v27_v5 = vsub.s32 1, %v340_v2  ;;  %v31_v6 = vsub.s32 2, %v340_v2  ;;  %v23_v7 = vsub.s32 0, %v340_v2 }
   0x5   :  { %v19_v8 = vadd.s32 40, %v340_v2  ;;  %v18_v12 = vadd.s32 32, %v340_v2  ;;  %v17_v13 = vadd.s32 24, %v340_v2  ;;  %v16_v15 = vadd.s32 16, %v340_v2 }
   0x6   :  { %v28_v9 = vrot.slane %v11_v3, %v27_v5  ;;  %v32_v10 = vrot.slane %v11_v3, %v31_v6  ;;  %v24_v11 = vrot.slane %v11_v3, %v23_v7  ;;  %v15_v16 = vadd.s32 8, %v340_v2 }
   0x8   :  { %vm52_vm1 = vcmp.eq.s32.totalorder %v20_v4, %v28_v9  ;;  %vm53_vm2 = vcmp.eq.s32.totalorder %v20_v4, %v32_v10  ;;  %vm51_vm3 = vcmp.eq.s32.totalorder %v20_v4, %v24_v11  ;;  %vm49_vm4 = vcmp.eq.s32.totalorder %v19_v8, %v28_v9 }
   0x9   :  { %269 = vmatprep.subr.msk.mxu0 %vm52_vm1, %v322_v14  ;;  %301 = vmatpush3.msk.msra.mxu1 %vm53_vm2, %v322_v14  ;;  %vm50_vm5 = vcmp.eq.s32.totalorder %v19_v8, %v32_v10  ;;  %vm48_vm6 = vcmp.eq.s32.totalorder %v19_v8, %v24_v11  ;;  %vm46_vm7 = vcmp.eq.s32.totalorder %v18_v12, %v28_v9 }
   0xa   :  { %270 = vmatpush1.msk.msra.mxu0 %vm51_vm3, %v322_v14  ;;  %302 = vmatprep.subr.mxu1 %v320_v1  ;;  %vm47_vm8 = vcmp.eq.s32.totalorder %v18_v12, %v32_v10  ;;  %vm45_vm9 = vcmp.eq.s32.totalorder %v18_v12, %v24_v11  ;;  %vm43_vm10 = vcmp.eq.s32.totalorder %v17_v13, %v28_v9 }
   0xb   :  { %271 = vmatprep.subr.msk.mxu0 %vm49_vm4, %v322_v14  ;;  %303 = vmatpush3.msk.msra.mxu1 %vm50_vm5, %v322_v14  ;;  %vm44_vm11 = vcmp.eq.s32.totalorder %v17_v13, %v32_v10  ;;  %vm42_vm12 = vcmp.eq.s32.totalorder %v17_v13, %v24_v11  ;;  %vm40_vm13 = vcmp.eq.s32.totalorder %v16_v15, %v28_v9 }
   0xc   :  { %272 = vmatpush1.msk.msra.mxu0 %vm48_vm6, %v322_v14  ;;  %304 = vmatprep.subr.mxu1 %v320_v1  ;;  %vm41_vm14 = vcmp.eq.s32.totalorder %v16_v15, %v32_v10  ;;  %vm39_vm15 = vcmp.eq.s32.totalorder %v16_v15, %v24_v11  ;;  %vm37_vm0 = vcmp.eq.s32.totalorder %v15_v16, %v28_v9  ;;  %vm96_vm6 = vcmask 457728  }
   0xd   :  { %273 = vmatprep.subr.msk.mxu0 %vm46_vm7, %v322_v14  ;;  %305 = vmatpush3.msk.msra.mxu1 %vm47_vm8, %v322_v14  ;;  %vm38_vm1 = vcmp.eq.s32.totalorder %v15_v16, %v32_v10  ;;  %vm36_vm2 = vcmp.eq.s32.totalorder %v15_v16, %v24_v11  ;;  %vm34_vm3 = vcmp.eq.s32.totalorder %v340_v2, %v28_v9 }
   0xe   :  { %274 = vmatpush1.msk.msra.mxu0 %vm45_vm9, %v322_v14  ;;  %306 = vmatprep.subr.mxu1 %v320_v1  ;;  %vm35_vm4 = vcmp.eq.s32.totalorder %v340_v2, %v32_v10  ;;  %vm33_vm5 = vcmp.eq.s32.totalorder %v340_v2, %v24_v11 }
   0xf   :  { %275 = vmatprep.subr.msk.mxu0 %vm43_vm10, %v322_v14  ;;  %307 = vmatpush3.msk.msra.mxu1 %vm44_vm11, %v322_v14 }
  0x10   :  { %276 = vmatpush1.msk.msra.mxu0 %vm42_vm12, %v322_v14  ;;  %308 = vmatprep.subr.mxu1 %v320_v1 }
  0x11   :  { %277 = vmatprep.subr.msk.mxu0 %vm40_vm13, %v322_v14  ;;  %309 = vmatpush3.msk.msra.mxu1 %vm41_vm14, %v322_v14 }
  0x12   :  { %278 = vmatpush1.msk.msra.mxu0 %vm39_vm15, %v322_v14  ;;  %310 = vmatprep.subr.mxu1 %v320_v1 }
  0x13   :  { %279 = vmatprep.subr.msk.mxu0 %vm37_vm0, %v322_v14  ;;  %311 = vmatpush3.msk.msra.mxu1 %vm38_vm1, %v322_v14 }
  0x14   :  { %280 = vmatpush1.msk.msra.mxu0 %vm36_vm2, %v322_v14  ;;  %312 = vmatprep.subr.mxu1 %v320_v1 }
  0x15   :  { %281 = vmatprep.subr.msk.mxu0 %vm34_vm3, %v322_v14  ;;  %313 = vmatpush3.msk.msra.mxu1 %vm35_vm4, %v322_v14 }
  0x16   :  { %282 = vmatpush1.msk.msra.mxu0 %vm33_vm5, %v322_v14  ;;  %315 = vmatmul.mubr.msk.f32.vlgmr.msra.gmra.mxu1 %vm96_vm6, %v12_v17 }
  0x17   :  { %283 = vmatmul.mubr.msk.f32.vlgmr.msra.gmra.mxu0 %vm96_vm6, %v12_v17 }
  0xd6   :  { %v237_v18 = vpop.f32.mrf.mxu1 }
  0xd7   :  { %243 = vst [vmem:[%s378_s2 + $0x10] sm:$0xff] %v237_v18  ;;  %v166_v19 = vpop.f32.mrf.mxu0 }
  0xd8   :  { %241 = vst [vmem:[%s378_s2] sm:$0xff] %v166_v19  ;;  %v316_v20 = vpop.f32.mrf.mxu1 }
  0xd9   :  { %v168_v21 = vpop.f32.mrf.mxu0 }
  0xda   :  { %242 = vst [vmem:[%s378_s2 + $0x8] sm:$0xff] %v168_v21 }

</bundles_post_ra>
